<compile_context>
chip_gen: v5e
topology: v5e:2x2
jax: 0.10.0
libtpu: 0.0.40
codegen_flags: <defaults>
</compile_context>

<pallas_src>
import functools
import numpy as np
import jax
import jax.numpy as jnp
from jax.experimental import pallas as pl
from jax.experimental.pallas import tpu as pltpu


def _round_up(x, m):
    return -(-x // m) * m


# --------------------------- Pallas matmul kernel ----------------------------

def _mm_kernel(x_ref, w_ref, scale_ref, shift_ref, o_ref, *, relu, logsoftmax):
    # y = act((x @ w) * scale + shift), optional row-wise log_softmax epilogue
    y = jnp.dot(x_ref[...], w_ref[...], preferred_element_type=jnp.float32)
    y = y * scale_ref[...] + shift_ref[...]
    if relu:
        y = jnp.maximum(y, 0.0)
    if logsoftmax:
        m = jnp.max(y, axis=-1, keepdims=True)
        s = y - m
        y = s - jnp.log(jnp.sum(jnp.exp(s), axis=-1, keepdims=True))
    o_ref[...] = y.astype(o_ref.dtype)


def pallas_matmul(x, w, scale, shift, relu=False, logsoftmax=False,
                  out_dtype=jnp.float32, bm_max=512):
    """act((x @ w) * scale + shift); x:(M,K) w:(K,N) scale/shift:(N,).
    Operands are cast to bf16 for the MXU; accumulation is f32."""
    M, K = x.shape
    N = w.shape[1]
    x = x.astype(jnp.bfloat16)
    w = w.astype(jnp.bfloat16)
    Mp = _round_up(M, 16)
    if Mp <= bm_max:
        bm = Mp
    else:
        bm = bm_max
        Mp = _round_up(M, bm)
    if Mp != M:
        x = jnp.pad(x, ((0, Mp - M), (0, 0)))
    out = pl.pallas_call(
        functools.partial(_mm_kernel, relu=relu, logsoftmax=logsoftmax),
        out_shape=jax.ShapeDtypeStruct((Mp, N), out_dtype),
        grid=(Mp // bm,),
        in_specs=[pl.BlockSpec((bm, K), lambda i: (i, 0)),
                  pl.BlockSpec((K, N), lambda i: (0, 0)),
                  pl.BlockSpec((1, N), lambda i: (0, 0)),
                  pl.BlockSpec((1, N), lambda i: (0, 0))],
        out_specs=pl.BlockSpec((bm, N), lambda i: (i, 0)),
        compiler_params=pltpu.CompilerParams(
            dimension_semantics=("parallel",),
            vmem_limit_bytes=48 << 20),
    )(x, w,
      scale.reshape(1, N).astype(jnp.float32),
      shift.reshape(1, N).astype(jnp.float32))
    return out[:M] if Mp != M else out


# --------------------- Pallas bidirectional LSTM kernel -----------------------

def _bilstm_kernel(lens_ref, gxf_ref, gxb_ref, wbig_ref, hof_ref, hob_ref,
                   h_sc, c_sc, *, B, Hp, TC, Tpad):
    i = pl.program_id(0)

    @pl.when(i == 0)
    def _():
        h_sc[...] = jnp.zeros_like(h_sc)
        c_sc[...] = jnp.zeros_like(c_sc)

    lens = lens_ref[...]                                        # (2B, 1) int32
    row = jax.lax.broadcasted_iota(jnp.int32, (2 * B, 1), 0)
    is_bwd = row >= B                                           # (2B, 1) bool
    t0 = i * TC

    def step(j, carry):
        t_f = t0 + j                                            # forward global time
        t_b = (Tpad - 1) - t_f                                  # backward global time
        # fwd rows come from chunk row j, bwd rows from the reversed chunk row
        gx = jnp.concatenate([gxf_ref[j], gxb_ref[TC - 1 - j]],
                             axis=0).astype(jnp.float32)        # (2B, 4Hp)
        h = h_sc[...]                                           # (2B, Hp) f32
        # block-diagonal stacking: fwd rows use Whh_f, bwd rows use Whh_b
        h2 = jnp.concatenate([jnp.where(is_bwd, 0.0, h),
                              jnp.where(is_bwd, h, 0.0)], axis=-1)
        gates = gx + jnp.dot(h2.astype(jnp.bfloat16), wbig_ref[...],
                             preferred_element_type=jnp.float32)
        i_g = jax.nn.sigmoid(gates[:, 0:Hp])                    # PyTorch order i,f,g,o
        f_g = jax.nn.sigmoid(gates[:, Hp:2 * Hp])
        g_g = jnp.tanh(gates[:, 2 * Hp:3 * Hp])
        o_g = jax.nn.sigmoid(gates[:, 3 * Hp:4 * Hp])
        c_new = f_g * c_sc[...] + i_g * g_g
        h_new = o_g * jnp.tanh(c_new)
        tt = jnp.where(is_bwd, t_b, t_f)                        # (2B, 1)
        m = (tt < lens).astype(jnp.float32)                     # 1 valid / 0 padded
        c_sc[...] = m * c_new + (1.0 - m) * c_sc[...]
        h_sc[...] = m * h_new + (1.0 - m) * h_sc[...]
        h_out = (m * h_new).astype(hof_ref.dtype)               # packed: zeros past len
        hof_ref[j] = h_out[0:B]
        hob_ref[TC - 1 - j] = h_out[B:2 * B]
        return carry

    jax.lax.fori_loop(0, TC, step, 0)


def pallas_bilstm(gx, w_big, lens2, *, Hp, TC):
    """Fused bidirectional masked LSTM recurrence.
    gx: (Tpad, B, 8Hp) bf16 = [fwd gate pre-acts | bwd gate pre-acts]
    w_big: (2Hp, 4Hp) bf16 block-diag recurrent weight; lens2: (2B, 1) int32.
    Returns hf, hb: (Tpad, B, Hp) bf16 (zeros at padded positions)."""
    Tpad, B, G2 = gx.shape
    G = G2 // 2
    nC = Tpad // TC
    kernel = functools.partial(_bilstm_kernel, B=B, Hp=Hp, TC=TC, Tpad=Tpad)
    return pl.pallas_call(
        kernel,
        out_shape=(jax.ShapeDtypeStruct((Tpad, B, Hp), jnp.bfloat16),
                   jax.ShapeDtypeStruct((Tpad, B, Hp), jnp.bfloat16)),
        grid=(nC,),
        in_specs=[pl.BlockSpec((2 * B, 1), lambda i: (0, 0)),
                  pl.BlockSpec((TC, B, G), lambda i: (i, 0, 0)),
                  pl.BlockSpec((TC, B, G), lambda i: (nC - 1 - i, 0, 1)),
                  pl.BlockSpec((2 * Hp, G), lambda i: (0, 0))],
        out_specs=(pl.BlockSpec((TC, B, Hp), lambda i: (i, 0, 0)),
                   pl.BlockSpec((TC, B, Hp), lambda i: (nC - 1 - i, 0, 0))),
        scratch_shapes=[pltpu.VMEM((2 * B, Hp), jnp.float32),
                        pltpu.VMEM((2 * B, Hp), jnp.float32)],
        compiler_params=pltpu.CompilerParams(
            dimension_semantics=("arbitrary",),
            vmem_limit_bytes=48 << 20),
    )(lens2, gx, gx, w_big)


# --------------------------- glue (plain JAX) --------------------------------

def bn_fold(gamma, beta, mean, var, eps=1e-5):
    scale = gamma / jnp.sqrt(var + eps)
    shift = beta - mean * scale
    return scale, shift


def im2col(x_btc, K):
    """x_btc: (B, T, C) -> (B*Tout, C*K) with column index c*K + k."""
    B, T, C = x_btc.shape
    Tout = T - K + 1
    cols = jnp.stack([x_btc[:, k:k + Tout, :] for k in range(K)], axis=-1)
    return cols.reshape(B * Tout, C * K), Tout
# TODO(synk): im2col still materializes C*K columns; a shift-and-accumulate conv
#             (k as a reduction grid axis) would cut HBM traffic further on v5e.


def init_params(key, input_dim, hidden_dim, output_dim, num_layer):
    """Raw parameters in PyTorch-equivalent layouts (BN already folded, eval mode)."""
    keys = jax.random.split(key, 64)
    it = iter(keys)

    def nrm(shape, scale=0.1):
        return scale * jax.random.normal(next(it), shape, jnp.float32)

    def bn(C):
        gamma = 1.0 + 0.1 * jax.random.normal(next(it), (C,), jnp.float32)
        beta = 0.1 * jax.random.normal(next(it), (C,), jnp.float32)
        mean = 0.1 * jax.random.normal(next(it), (C,), jnp.float32)
        var = jax.random.uniform(next(it), (C,), jnp.float32, minval=0.5, maxval=1.5)
        return bn_fold(gamma, beta, mean, var)

    K = 5
    p = {}
    p['conv1_w'] = nrm((input_dim * K, 512))
    p['bn1_scale'], p['bn1_shift'] = bn(512)
    p['conv2_w'] = nrm((512 * K, 512))
    p['bn2_scale'], p['bn2_shift'] = bn(512)
    p['conv3_w'] = nrm((512 * K, 512))
    p['bn3_scale'], p['bn3_shift'] = bn(512)
    p['lstm'] = []
    for layer in range(num_layer):
        in_sz = 512 if layer == 0 else 2 * hidden_dim
        dirs = []
        for _d in range(2):                                  # fwd, bwd
            W_ih = nrm((4 * hidden_dim, in_sz))
            W_hh = nrm((4 * hidden_dim, hidden_dim))
            b_ih = nrm((4 * hidden_dim,))
            b_hh = nrm((4 * hidden_dim,))
            dirs.append((W_ih, W_hh, b_ih, b_hh))
        p['lstm'].append(dirs)
    p['lin1_w'] = nrm((2 * hidden_dim, 512))
    p['lin1_b'] = nrm((512,))
    p['bn4_scale'], p['bn4_shift'] = bn(512)
    p['lin2_w'] = nrm((512, output_dim))
    p['lin2_b'] = nrm((output_dim,))
    return p


def prepare_params(raw, input_dim, hidden_dim, output_dim, num_layer):
    """Convert raw PyTorch-layout params to lane-padded, bf16 device layouts."""
    H = hidden_dim
    Hp = max(128, _round_up(H, 128))
    p = {'H': H, 'Hp': Hp, 'num_layer': num_layer, 'output_dim': output_dim}

    for n in (1, 2, 3):
        p[f'conv{n}_w'] = jnp.asarray(raw[f'conv{n}_w'], jnp.bfloat16)
        p[f'bn{n}_scale'] = jnp.asarray(raw[f'bn{n}_scale'], jnp.float32)
        p[f'bn{n}_shift'] = jnp.asarray(raw[f'bn{n}_shift'], jnp.float32)

    p['lstm'] = []
    for layer in range(num_layer):
        in_sz = 512 if layer == 0 else 2 * H
        in_pad = 512 if layer == 0 else 2 * Hp
        if layer == 0:
            in_rows = np.arange(in_sz)
        else:  # layer>=1 input lanes: fwd features at [0:H], bwd features at [Hp:Hp+H]
            in_rows = np.concatenate([np.arange(H), Hp + np.arange(H)])
        wih_cat = np.zeros((in_pad, 8 * Hp), np.float32)
        bias_cat = np.zeros((8 * Hp,), np.float32)
        wbig = np.zeros((2 * Hp, 4 * Hp), np.float32)
        for d in range(2):
            W_ih, W_hh, b_ih, b_hh = [np.asarray(a) for a in raw['lstm'][layer][d]]
            bsum = b_ih + b_hh
            for g in range(4):                               # PyTorch gate order i,f,g,o
                cols = d * 4 * Hp + g * Hp + np.arange(H)
                wih_cat[np.ix_(in_rows, cols)] = W_ih[g * H:(g + 1) * H, :].T
                bias_cat[cols] = bsum[g * H:(g + 1) * H]
                wbig[d * Hp:d * Hp + H, g * Hp:g * Hp + H] = W_hh[g * H:(g + 1) * H, :].T
        p['lstm'].append({'wih': jnp.asarray(wih_cat, jnp.bfloat16),
                          'bias': jnp.asarray(bias_cat, jnp.float32),
                          'wbig': jnp.asarray(wbig, jnp.bfloat16)})

    # linear1 + BN(eval) fold, with lane-padded input rows
    lin1_w = np.asarray(raw['lin1_w'])                       # (2H, 512)
    lin1_b = np.asarray(raw['lin1_b'])
    rows_2h = np.concatenate([np.arange(H), Hp + np.arange(H)])
    lin1_w_pad = np.zeros((2 * Hp, 512), np.float32)
    lin1_w_pad[rows_2h, :] = lin1_w
    bn4_scale = np.asarray(raw['bn4_scale'])
    bn4_shift = np.asarray(raw['bn4_shift'])
    p['lin1_w'] = jnp.asarray(lin1_w_pad, jnp.bfloat16)
    p['lin1_scale'] = jnp.asarray(bn4_scale, jnp.float32)
    p['lin1_shift'] = jnp.asarray(lin1_b * bn4_scale + bn4_shift, jnp.float32)

    # linear2: pad output dim to 128 lanes; padded logits biased to -1e30 so the
    # in-kernel log_softmax ignores them, wrapper slices them off.
    lin2_w = np.asarray(raw['lin2_w'])                       # (512, output_dim)
    lin2_b = np.asarray(raw['lin2_b'])
    Np = max(128, _round_up(output_dim, 128))
    w2 = np.zeros((512, Np), np.float32)
    w2[:, :output_dim] = lin2_w
    b2 = np.full((Np,), -1e30, np.float32)
    b2[:output_dim] = lin2_b
    p['lin2_w'] = jnp.asarray(w2, jnp.bfloat16)
    p['lin2_scale'] = jnp.ones((Np,), jnp.float32)
    p['lin2_shift'] = jnp.asarray(b2, jnp.float32)
    p['Np'] = Np
    return p


def bilstm1_forward(params, x, lengths):
    """x: (T, B, C_in) float32 ; lengths: numpy int array (B,).
    Returns (log_probs (Tmax, B, output_dim), out_lens)."""
    T, B, C_in = x.shape
    K = 5
    Hp = params['Hp']

    # ---- CNN stack (im2col + fused matmul/BN/ReLU epilogue, bf16 activations) ----
    h = jnp.transpose(x, (1, 0, 2)).astype(jnp.bfloat16)   # (B, T, C_in)
    h = jnp.pad(h, ((0, 0), (6, 6), (0, 0)))               # conv1 padding=6
    cols, T1 = im2col(h, K)
    h = pallas_matmul(cols, params['conv1_w'], params['bn1_scale'],
                      params['bn1_shift'], relu=True,
                      out_dtype=jnp.bfloat16).reshape(B, T1, 512)
    cols, T2 = im2col(h, K)
    h = pallas_matmul(cols, params['conv2_w'], params['bn2_scale'],
                      params['bn2_shift'], relu=True,
                      out_dtype=jnp.bfloat16).reshape(B, T2, 512)
    cols, T3 = im2col(h, K)
    h = pallas_matmul(cols, params['conv3_w'], params['bn3_scale'],
                      params['bn3_shift'], relu=False,
                      out_dtype=jnp.bfloat16).reshape(B, T3, 512)
    h = jnp.transpose(h, (1, 0, 2))                        # (T3, B, 512); T3 == T

    # ---- pack_padded_sequence semantics via in-kernel length masking ----
    lengths_np = np.asarray(lengths)
    Tmax = int(lengths_np.max())
    TC = Tmax if Tmax <= 32 else 32                        # time-chunk per grid step
    Tpad = _round_up(Tmax, TC)
    if Tpad <= T3:
        h = h[:Tpad]
    else:
        h = jnp.pad(h, ((0, Tpad - T3), (0, 0), (0, 0)))
    lens = jnp.asarray(lengths_np, jnp.int32)
    lens2 = jnp.concatenate([lens, lens]).reshape(2 * B, 1)  # fwd rows | bwd rows

    # ---- multi-layer bidirectional LSTM ----
    inp = h                                                 # (Tpad, B, C) bf16
    for layer in range(params['num_layer']):
        lp = params['lstm'][layer]
        C = inp.shape[-1]
        gx = pallas_matmul(inp.reshape(Tpad * B, C), lp['wih'],
                           jnp.ones((8 * Hp,), jnp.float32), lp['bias'],
                           out_dtype=jnp.bfloat16)
        gx = gx.reshape(Tpad, B, 8 * Hp)                    # [fwd 4Hp | bwd 4Hp]
        hf, hb = pallas_bilstm(gx, lp['wbig'], lens2, Hp=Hp, TC=TC)
        inp = jnp.concatenate([hf, hb], axis=-1)            # (Tpad, B, 2Hp)
        # TODO(synk): inter-layer LSTM dropout omitted (module evaluated in eval mode)

    # ---- linear -> BN(eval) -> ReLU -> linear2 -> log_softmax ----
    flat = inp.reshape(Tpad * B, 2 * Hp)
    h1 = pallas_matmul(flat, params['lin1_w'], params['lin1_scale'],
                       params['lin1_shift'], relu=True, out_dtype=jnp.bfloat16)
    h2 = pallas_matmul(h1, params['lin2_w'], params['lin2_scale'],
                       params['lin2_shift'], relu=False, logsoftmax=True,
                       out_dtype=jnp.float32)
    out = h2.reshape(Tpad, B, params['Np'])[:Tmax, :, :params['output_dim']]
    return out, lengths_np


# --------------------------------- main --------------------------------------

if __name__ == "__main__":
    key = jax.random.PRNGKey(0)
    T, B, input_dim = 12, 2, 16
    hidden_dim, output_dim, num_layer, dropout = 32, 40, 2, 0.2  # dropout unused (eval)

    kp, kx = jax.random.split(key)
    raw = init_params(kp, input_dim, hidden_dim, output_dim, num_layer)
    params = prepare_params(raw, input_dim, hidden_dim, output_dim, num_layer)
    x = jax.random.normal(kx, (T, B, input_dim), jnp.float32)
    lengths = np.array([12, 9], dtype=np.int32)

    out, out_lens = bilstm1_forward(params, x, lengths)
    out = jax.block_until_ready(out)

    assert out.shape == (int(lengths.max()), B, output_dim), out.shape
    assert bool(jnp.all(jnp.isfinite(out)))
    # log_softmax rows should (approximately) sum to 1 in prob space
    assert bool(jnp.allclose(jnp.sum(jnp.exp(out), axis=-1), 1.0, atol=1e-4))
    print("KERNEL_OK")
</pallas_src>

<mosaic_0001>
module attributes {stable_mosaic.version = 11 : i64} {
  func.func @_mm_kernel(%arg0: i32, %arg1: memref<48x80xbf16, #tpu.memory_space<vmem>>, %arg2: memref<80x512xbf16, #tpu.memory_space<vmem>>, %arg3: memref<1x512xf32, #tpu.memory_space<vmem>>, %arg4: memref<1x512xf32, #tpu.memory_space<vmem>>, %arg5: memref<48x512xbf16, #tpu.memory_space<vmem>>) attributes {dimension_semantics = [#tpu.dimension_semantics<parallel>], iteration_bounds = array<i64: 1>, scalar_prefetch = 0 : i64, scratch_operands = 0 : i64, tpu.core_type = #tpu.core_type<tc>, window_params = [{transform_indices = @transform_0, window_bounds = array<i64: 48, 80>}, {pipeline_mode = #tpu.pipeline_mode<synchronous>, transform_indices = @transform_1, window_bounds = array<i64: 80, 512>}, {pipeline_mode = #tpu.pipeline_mode<synchronous>, transform_indices = @transform_2, window_bounds = array<i64: 1, 512>}, {pipeline_mode = #tpu.pipeline_mode<synchronous>, transform_indices = @transform_3, window_bounds = array<i64: 1, 512>}, {transform_indices = @transform_4, window_bounds = array<i64: 48, 512>}]} {
    %c0 = arith.constant 0 : index
    %c0_0 = arith.constant 0 : index
    %0 = vector.load %arg1[%c0, %c0_0] : memref<48x80xbf16, #tpu.memory_space<vmem>>, vector<48x80xbf16>
    %c0_1 = arith.constant 0 : index
    %c0_2 = arith.constant 0 : index
    %1 = vector.load %arg2[%c0_1, %c0_2] : memref<80x512xbf16, #tpu.memory_space<vmem>>, vector<80x512xbf16>
    %cst = arith.constant dense<0.000000e+00> : vector<48x512xf32>
    %2 = tpu.matmul %0, %1, %cst {dimension_numbers = #tpu.dot_dimension_numbers<[1], [0], [0], [1], [0, 0, 1, 1], [], []>} : vector<48x80xbf16>, vector<80x512xbf16>, vector<48x512xf32> -> vector<48x512xf32>
    %c0_3 = arith.constant 0 : index
    %c0_4 = arith.constant 0 : index
    %3 = vector.load %arg3[%c0_3, %c0_4] : memref<1x512xf32, #tpu.memory_space<vmem>>, vector<1x512xf32>
    %4 = vector.broadcast %3 : vector<1x512xf32> to vector<48x512xf32>
    %5 = arith.mulf %2, %4 : vector<48x512xf32>
    %c0_5 = arith.constant 0 : index
    %c0_6 = arith.constant 0 : index
    %6 = vector.load %arg4[%c0_5, %c0_6] : memref<1x512xf32, #tpu.memory_space<vmem>>, vector<1x512xf32>
    %7 = vector.broadcast %6 : vector<1x512xf32> to vector<48x512xf32>
    %8 = arith.addf %5, %7 : vector<48x512xf32>
    %cst_7 = arith.constant 0.000000e+00 : f32
    %9 = vector.broadcast %cst_7 : f32 to vector<48x512xf32>
    %10 = arith.maximumf %8, %9 : vector<48x512xf32>
    %11 = arith.truncf %10 : vector<48x512xf32> to vector<48x512xbf16>
    %c0_8 = arith.constant 0 : index
    %c0_9 = arith.constant 0 : index
    %12 = vector.load %arg5[%c0_8, %c0_9] : memref<48x512xbf16, #tpu.memory_space<vmem>>, vector<48x512xbf16>
    tpu.vector_store %arg5[%c0_8, %c0_9], %11 {strides = array<i32>} : memref<48x512xbf16, #tpu.memory_space<vmem>>, vector<48x512xbf16>,
    return
  }
  func.func @transform_0(%arg0: i32) -> (i32, i32) {
    %c0_i32 = arith.constant 0 : i32
    %c0_i32_0 = arith.constant 0 : i32
    return %arg0, %c0_i32 : i32, i32
  }
  func.func @transform_1(%arg0: i32) -> (i32, i32) {
    %c0_i32 = arith.constant 0 : i32
    %c0_i32_0 = arith.constant 0 : i32
    %c0_i32_1 = arith.constant 0 : i32
    return %c0_i32, %c0_i32_0 : i32, i32
  }
  func.func @transform_2(%arg0: i32) -> (i32, i32) {
    %c0_i32 = arith.constant 0 : i32
    %c0_i32_0 = arith.constant 0 : i32
    %c0_i32_1 = arith.constant 0 : i32
    return %c0_i32, %c0_i32_0 : i32, i32
  }
  func.func @transform_3(%arg0: i32) -> (i32, i32) {
    %c0_i32 = arith.constant 0 : i32
    %c0_i32_0 = arith.constant 0 : i32
    %c0_i32_1 = arith.constant 0 : i32
    return %c0_i32, %c0_i32_0 : i32, i32
  }
  func.func @transform_4(%arg0: i32) -> (i32, i32) {
    %c0_i32 = arith.constant 0 : i32
    %c0_i32_0 = arith.constant 0 : i32
    return %arg0, %c0_i32 : i32, i32
  }
}

</mosaic_0001>

<bundles_post_ra>
// kernel: tpu_custom_call.1
= control target key start
LH: loop header
LB: loop body
LE: loop exit
PB: predicated region body
PF: predicated region fallthrough
CT: control target
= control target key end

     0   :  { %9 = vsyncpa [#allocation3], 0  ;;  %s857_s0 = inlined_call_operand.hbm [shape: bf16[48,80], index: 0, kind: input, shape index: {}]   ;;  %s858_s1 = inlined_call_operand.hbm [shape: bf16[80,512], index: 1, kind: input, shape index: {}]   ;;  %s859_s2 = inlined_call_operand.hbm [shape: f32[1,512], index: 2, kind: input, shape index: {}]   ;;  %s860_s3 = inlined_call_operand.hbm [shape: f32[1,512], index: 3, kind: input, shape index: {}]   ;;  %s861_s4 = inlined_call_operand.hbm [shape: bf16[48,512], index: 4, kind: output, shape index: {}]  }
   0x1   :  { %10 = vsyncpa [#allocation6], 0 }
   0x2   :  { %11 = vsyncpa [#allocation9], 0  ;;  %s30_s17 = sshll.u32 %s858_s1, 4  ;;  %s31_s17 = int_to_ptr.hbm [resolvable:$true] %s30_s17 }
   0x3   :  { %12 = vsyncpa [#allocation4], 0  ;;  %s726_s18 = smov [#allocation5]   ;;  %s17_s22 = sshll.u32 %s857_s0, 4  ;;  %s18_s22 = int_to_ptr.hbm [resolvable:$true] %s17_s22 }
   0x4   :  { %s32_s19 = sshll.u32 %s726_s18, 4  ;;  %s727_s23 = smov 256   ;;  %s33_s19 = int_to_ptr.vmem [resolvable:$true] %s32_s19 }
   0x5   :  { %s728_s24 = smov 16   ;;  %s729_s25 = smov [#allocation2]  }
   0x6   :  { %38 = dma.hbm_to_vmem [thread:$0]  %s31_s17, 2560, %s33_s19, [#allocation6], %s727_s23, %s727_s23, %s728_s24  }
   0x7   :  { %s19_s26 = sshll.u32 %s729_s25, 4  ;;  %s730_s1 = smov 64   ;;  %s20_s26 = int_to_ptr.vmem [resolvable:$true] %s19_s26 }
   0x8   :  { %s731_s27 = smov 4   ;;  %s44_s30 = sshll.u32 %s859_s2, 4  ;;  %s45_s30 = int_to_ptr.hbm [resolvable:$true] %s44_s30 }
   0x9   :  { %25 = dma.hbm_to_vmem [thread:$0]  %s18_s22, 384, %s20_s26, [#allocation3], %s730_s1, %s730_s1, %s731_s27  }
   0xa   :  { %s732_s5 = smov [#allocation7]   ;;  %s55_s8 = sshll.u32 %s860_s3, 4  ;;  %s56_s8 = int_to_ptr.hbm [resolvable:$true] %s55_s8 }
   0xb   :  { %s46_s0 = sshll.u32 %s732_s5, 4  ;;  %s733_s9 = smov [#allocation8]   ;;  %s47_s0 = int_to_ptr.vmem [resolvable:$true] %s46_s0 }
   0xc   :  { %49 = dma.hbm_to_vmem [thread:$0]  %s45_s30, 64, %s47_s0, [#allocation6]  }
   0xd   :  { %s57_s10 = sshll.u32 %s733_s9, 4  ;;  %s58_s10 = int_to_ptr.vmem [resolvable:$true] %s57_s10 }
   0xe   :  { %60 = dma.hbm_to_vmem [thread:$0]  %s56_s8, 64, %s58_s10, [#allocation9]  }
   0xf   :  { %718 = dma.done.wait [#allocation3], 384  }
  0x10   :  { %719 = vsyncadd [#allocation3], 4294966912 }
  0x11   :  { %720 = dma.done.wait [#allocation6], 2624  }
  0x12   :  { %721 = vsyncadd [#allocation6], 4294964672 }
  0x13   :  { %722 = dma.done.wait [#allocation9], 64  }
  0x14   :  { %723 = vsyncadd [#allocation9], 4294967232  ;;  %v540_v0 = vld [vmem:[#allocation5 + $0x80] sm:$0xf]  ;;  %v587_v1 = vld [vmem:[#allocation5 + $0x8c] sm:$0xf0] }
  0x15   :  { %v585_v2 = vld [vmem:[#allocation5 + $0x84] sm:$0xf]  ;;  %v541_v3 = vor.u32 %v587_v1, %v540_v0  ;;  %v542_v4 = vld [vmem:[#allocation5 + $0x90] sm:$0xf0]  ;;  %v548_v5 = vld [vmem:[#allocation5 + $0x88] sm:$0xf] }
  0x16   :  { %v588_v6 = vld [vmem:[#allocation5 + $0x94] sm:$0xf0]  ;;  %v545_v7 = vor.u32 %v585_v2, %v542_v4  ;;  %v586_v9 = vld [vmem:[#allocation5 + $0x8c] sm:$0xf]  ;;  %v550_v10 = vld [vmem:[#allocation5 + $0x98] sm:$0xf0] }
  0x17   :  { %v549_v8 = vor.u32 %v588_v6, %v548_v5  ;;  %v524_v11 = vld [vmem:[#allocation5 + $0x60] sm:$0xf]  ;;  %232 = vmatpush.bf16.msra.mxu0 %v541_v3  ;;  %v553_v12 = vor.u32 %v586_v9, %v550_v10  ;;  %v583_v13 = vld [vmem:[#allocation5 + $0x6c] sm:$0xf0]  ;;  %v581_v14 = vld [vmem:[#allocation5 + $0x64] sm:$0xf] }
  0x18   :  { %v526_v15 = vld [vmem:[#allocation5 + $0x70] sm:$0xf0]  ;;  %256 = vmatpush.bf16.msra.mxu1 %v545_v7  ;;  %v525_v16 = vor.u32 %v583_v13, %v524_v11  ;;  %v532_v18 = vld [vmem:[#allocation5 + $0x68] sm:$0xf]  ;;  %v584_v19 = vld [vmem:[#allocation5 + $0x74] sm:$0xf0] }
  0x19   :  { %280 = vmatpush.bf16.msra.mxu2 %v549_v8  ;;  %v529_v17 = vor.u32 %v581_v14, %v526_v15  ;;  %v582_v20 = vld [vmem:[#allocation5 + $0x6c] sm:$0xf]  ;;  %304 = vmatpush.bf16.msra.mxu3 %v553_v12  ;;  %v533_v21 = vor.u32 %v584_v19, %v532_v18  ;;  %v534_v22 = vld [vmem:[#allocation5 + $0x78] sm:$0xf0]  ;;  %v508_v23 = vld [vmem:[#allocation5 + $0x40] sm:$0xf] }
  0x1a   :  { %v579_v24 = vld [vmem:[#allocation5 + $0x4c] sm:$0xf0]  ;;  %v537_v25 = vor.u32 %v582_v20, %v534_v22  ;;  %v577_v26 = vld [vmem:[#allocation5 + $0x44] sm:$0xf]  ;;  %v510_v27 = vld [vmem:[#allocation5 + $0x50] sm:$0xf0] }
  0x1b   :  { %v516_v28 = vld [vmem:[#allocation5 + $0x48] sm:$0xf]  ;;  %233 = vmatpush.bf16.msra.mxu0 %v525_v16  ;;  %v509_v29 = vor.u32 %v579_v24, %v508_v23  ;;  %v580_v30 = vld [vmem:[#allocation5 + $0x54] sm:$0xf0]  ;;  %v578_v31 = vld [vmem:[#allocation5 + $0x4c] sm:$0xf]  ;;  %v513_v33 = vor.u32 %v577_v26, %v510_v27 }
  0x1c   :  { %v518_v32 = vld [vmem:[#allocation5 + $0x58] sm:$0xf0]  ;;  %257 = vmatpush.bf16.msra.mxu1 %v529_v17  ;;  %v517_v34 = vor.u32 %v580_v30, %v516_v28  ;;  %v492_v35 = vld [vmem:[#allocation5 + $0x20] sm:$0xf]  ;;  %v575_v36 = vld [vmem:[#allocation5 + $0x2c] sm:$0xf0] }
  0x1d   :  { %281 = vmatpush.bf16.msra.mxu2 %v533_v21  ;;  %v573_v37 = vld [vmem:[#allocation5 + $0x24] sm:$0xf]  ;;  %305 = vmatpush.bf16.msra.mxu3 %v537_v25  ;;  %v521_v38 = vor.u32 %v578_v31, %v518_v32  ;;  %v494_v39 = vld [vmem:[#allocation5 + $0x30] sm:$0xf0]  ;;  %v500_v40 = vld [vmem:[#allocation5 + $0x28] sm:$0xf]  ;;  %v493_v44 = vor.u32 %v575_v36, %v492_v35 }
  0x1e   :  { %v576_v41 = vld [vmem:[#allocation5 + $0x34] sm:$0xf0]  ;;  %v574_v42 = vld [vmem:[#allocation5 + $0x2c] sm:$0xf]  ;;  %v502_v43 = vld [vmem:[#allocation5 + $0x38] sm:$0xf0]  ;;  %v497_v45 = vor.u32 %v573_v37, %v494_v39 }
  0x1f   :  { %234 = vmatpush.bf16.msra.mxu0 %v509_v29  ;;  %v501_v46 = vor.u32 %v576_v41, %v500_v40  ;;  %v476_v47 = vld [vmem:[#allocation5] sm:$0xf]  ;;  %v571_v48 = vld [vmem:[#allocation5 + $0xc] sm:$0xf0]  ;;  %v569_v49 = vld [vmem:[#allocation5 + $0x4] sm:$0xf]  ;;  %v505_v50 = vor.u32 %v574_v42, %v502_v43 }
  0x20   :  { %258 = vmatpush.bf16.msra.mxu1 %v513_v33  ;;  %v478_v51 = vld [vmem:[#allocation5 + $0x10] sm:$0xf0]  ;;  %v484_v52 = vld [vmem:[#allocation5 + $0x8] sm:$0xf]  ;;  %v572_v53 = vld [vmem:[#allocation5 + $0x14] sm:$0xf0]  ;;  %v477_v56 = vor.u32 %v571_v48, %v476_v47 }
  0x21   :  { %282 = vmatpush.bf16.msra.mxu2 %v517_v34  ;;  %306 = vmatpush.bf16.msra.mxu3 %v521_v38  ;;  %v570_v54 = vld [vmem:[#allocation5 + $0xc] sm:$0xf]  ;;  %v486_v55 = vld [vmem:[#allocation5 + $0x18] sm:$0xf0]  ;;  %v481_v57 = vor.u32 %v569_v49, %v478_v51  ;;  %v485_v58 = vor.u32 %v572_v53, %v484_v52  ;;  %vm219_vm0 = vcmask 654336   ;;  %v567_v61 = vld [vmem:[#allocation2 + $0x8] sm:$0xff] }
  0x22   :  { %v489_v59 = vor.u32 %v570_v54, %v486_v55  ;;  %v566_v60 = vld [vmem:[#allocation2] sm:$0xff]  ;;  %v568_v62 = vld [vmem:[#allocation2 + $0x10] sm:$0xff]  ;;  %v325_v63 = vld [vmem:[#allocation7] sm:$0xf]  ;;  %s734_s2 = smov [#allocation10]   ;;  %s447_s13 = sshll.u32 %s861_s4, 4  ;;  %s448_s13 = int_to_ptr.hbm [resolvable:$true] %s447_s13 }
  0x23   :  { %235 = vmatpush.bf16.msra.mxu0 %v493_v44  ;;  %v359_v0 = vld [vmem:[#allocation8] sm:$0xf]  ;;  %v787_v1 = vperm.slane %v325_v63, 0  ;;  %v789_v2 = vperm.slane %v325_v63, 1  ;;  %v799_v11 = vperm.slane %v325_v63, 2  ;;  %v801_v13 = vperm.slane %v325_v63, 3 }
  0x24   :  { %259 = vmatpush.bf16.msra.mxu1 %v497_v45  ;;  %v791_v3 = vperm.slane %v359_v0, 0  ;;  %v793_v5 = vperm.slane %v359_v0, 1  ;;  %v803_v15 = vperm.slane %v359_v0, 2  ;;  %v805_v17 = vperm.slane %v359_v0, 3  ;;  %s445_s3 = sshll.u32 %s734_s2, 4  ;;  %s446_s3 = int_to_ptr.vmem [resolvable:$true] %s445_s3 }
  0x25   :  { %283 = vmatpush.bf16.msra.mxu2 %v501_v46  ;;  %307 = vmatpush.bf16.msra.mxu3 %v505_v50 }
  0x27   :  { %236 = vmatpush.bf16.msra.mxu0 %v477_v56 }
  0x28   :  { %260 = vmatpush.bf16.msra.mxu1 %v481_v57 }
  0x29   :  { %284 = vmatpush.bf16.msra.mxu2 %v485_v58  ;;  %308 = vmatpush.bf16.msra.mxu3 %v489_v59 }
  0x2a   :  { %554 = vmatmul.msk.bf16.vlgmr.msra.gmra.mxu0 %vm219_vm0, %v566_v60 }
  0x2b   :  { %557 = vmatmul.msk.bf16.vlgmr.msra.gmra.mxu1 %vm219_vm0, %v566_v60 }
  0x2c   :  { %560 = vmatmul.msk.bf16.vlgmr.msra.gmra.mxu2 %vm219_vm0, %v566_v60  ;;  %563 = vmatmul.msk.bf16.vlgmr.msra.gmra.mxu3 %vm219_vm0, %v566_v60 }
  0x3a   :  { %555 = vmatmul.msk.bf16.gmra.mxu0 %vm219_vm0, %v567_v61 }
  0x3b   :  { %558 = vmatmul.msk.bf16.gmra.mxu1 %vm219_vm0, %v567_v61 }
  0x3c   :  { %561 = vmatmul.msk.bf16.gmra.mxu2 %vm219_vm0, %v567_v61  ;;  %564 = vmatmul.msk.bf16.gmra.mxu3 %vm219_vm0, %v567_v61 }
  0x4a   :  { %556 = vmatmul.msk.bf16.gmra.mxu0 %vm219_vm0, %v568_v62 }
  0x4b   :  { %559 = vmatmul.msk.bf16.gmra.mxu1 %vm219_vm0, %v568_v62 }
  0x4c   :  { %562 = vmatmul.msk.bf16.gmra.mxu2 %vm219_vm0, %v568_v62  ;;  %565 = vmatmul.msk.bf16.gmra.mxu3 %vm219_vm0, %v568_v62 }
  0xa7   :  { %v238_v4 = vpop.f32.mrf.mxu0 }
  0xa8   :  { %v335_v6 = vmul.f32 %v787_v1, %v238_v4  ;;  %v262_v7 = vpop.f32.mrf.mxu1 }
  0xa9   :  { %v336_v8 = vmul.f32 %v789_v2, %v262_v7 }
  0xaa   :  { %v369_v9 = vadd.f32 %v791_v3, %v335_v6 }
  0xab   :  { %v370_v10 = vadd.f32 %v793_v5, %v336_v8 }
  0xac   :  { %v393_v12 = vmax.f32 %v369_v9, 0.0 }
  0xad   :  { %v394_v14 = vmax.f32 %v370_v10, 0.0 }
  0xaf   :  { %v286_v16 = vpop.f32.mrf.mxu2  ;;  %v417_v18 = vpack.c.bf16 %v394_v14, %v393_v12  ;;  %v310_v20 = vpop.f32.mrf.mxu3 }
  0xb0   :  { %v337_v19 = vmul.f32 %v799_v11, %v286_v16  ;;  %v240_v21 = vpop.f32.mrf.mxu0  ;;  %v338_v22 = vmul.f32 %v801_v13, %v310_v20  ;;  %v264_v24 = vpop.f32.mrf.mxu1 }
  0xb1   :  { %v339_v23 = vmul.f32 %v787_v1, %v240_v21  ;;  %429 = vst [vmem:[#allocation10] sm:$0xff] %v417_v18  ;;  %v340_v26 = vmul.f32 %v789_v2, %v264_v24 }
  0xb2   :  { %v371_v25 = vadd.f32 %v803_v15, %v337_v19  ;;  %v372_v27 = vadd.f32 %v805_v17, %v338_v22 }
  0xb3   :  { %v373_v28 = vadd.f32 %v791_v3, %v339_v23  ;;  %v374_v30 = vadd.f32 %v793_v5, %v340_v26 }
  0xb4   :  { %v395_v29 = vmax.f32 %v371_v25, 0.0  ;;  %v396_v31 = vmax.f32 %v372_v27, 0.0 }
  0xb5   :  { %v397_v32 = vmax.f32 %v373_v28, 0.0  ;;  %v398_v33 = vmax.f32 %v374_v30, 0.0 }
  0xb6   :  { %v418_v34 = vpack.c.bf16 %v396_v31, %v395_v29 }
  0xb7   :  { %v288_v35 = vpop.f32.mrf.mxu2  ;;  %v419_v36 = vpack.c.bf16 %v398_v33, %v397_v32  ;;  %v312_v38 = vpop.f32.mrf.mxu3 }
  0xb8   :  { %v341_v37 = vmul.f32 %v799_v11, %v288_v35  ;;  %v243_v39 = vpop.f32.mrf.mxu0  ;;  %430 = vst [vmem:[#allocation10 + $0x8] sm:$0xff] %v418_v34  ;;  %v342_v40 = vmul.f32 %v801_v13, %v312_v38  ;;  %v267_v42 = vpop.f32.mrf.mxu1 }
  0xb9   :  { %v343_v41 = vmul.f32 %v787_v1, %v243_v39  ;;  %431 = vst [vmem:[#allocation10 + $0x10] sm:$0xff] %v419_v36  ;;  %v344_v44 = vmul.f32 %v789_v2, %v267_v42 }
  0xba   :  { %v375_v43 = vadd.f32 %v803_v15, %v341_v37  ;;  %v376_v45 = vadd.f32 %v805_v17, %v342_v40 }
  0xbb   :  { %v377_v46 = vadd.f32 %v791_v3, %v343_v41  ;;  %v378_v48 = vadd.f32 %v793_v5, %v344_v44 }
  0xbc   :  { %v399_v47 = vmax.f32 %v375_v43, 0.0  ;;  %v400_v49 = vmax.f32 %v376_v45, 0.0 }
  0xbd   :  { %v401_v50 = vmax.f32 %v377_v46, 0.0  ;;  %v402_v51 = vmax.f32 %v378_v48, 0.0 }
  0xbe   :  { %v420_v52 = vpack.c.bf16 %v400_v49, %v399_v47 }
  0xbf   :  { %v291_v53 = vpop.f32.mrf.mxu2  ;;  %v421_v54 = vpack.c.bf16 %v402_v51, %v401_v50  ;;  %v315_v56 = vpop.f32.mrf.mxu3 }
  0xc0   :  { %v345_v55 = vmul.f32 %v799_v11, %v291_v53  ;;  %v245_v57 = vpop.f32.mrf.mxu0  ;;  %432 = vst [vmem:[#allocation10 + $0x18] sm:$0xff] %v420_v52  ;;  %v346_v58 = vmul.f32 %v801_v13, %v315_v56  ;;  %v269_v60 = vpop.f32.mrf.mxu1 }
  0xc1   :  { %v347_v59 = vmul.f32 %v787_v1, %v245_v57  ;;  %433 = vst [vmem:[#allocation10 + $0x20] sm:$0xff] %v421_v54  ;;  %v348_v62 = vmul.f32 %v789_v2, %v269_v60 }
  0xc2   :  { %v379_v61 = vadd.f32 %v803_v15, %v345_v55  ;;  %v380_v63 = vadd.f32 %v805_v17, %v346_v58 }
  0xc3   :  { %v381_v0 = vadd.f32 %v791_v3, %v347_v59  ;;  %v382_v6 = vadd.f32 %v793_v5, %v348_v62 }
  0xc4   :  { %v403_v4 = vmax.f32 %v379_v61, 0.0  ;;  %v404_v7 = vmax.f32 %v380_v63, 0.0 }
  0xc5   :  { %v405_v8 = vmax.f32 %v381_v0, 0.0  ;;  %v406_v9 = vmax.f32 %v382_v6, 0.0 }
  0xc6   :  { %v422_v10 = vpack.c.bf16 %v404_v7, %v403_v4 }
  0xc7   :  { %v293_v12 = vpop.f32.mrf.mxu2  ;;  %v423_v14 = vpack.c.bf16 %v406_v9, %v405_v8  ;;  %v317_v18 = vpop.f32.mrf.mxu3 }
  0xc8   :  { %v349_v16 = vmul.f32 %v799_v11, %v293_v12  ;;  %v248_v19 = vpop.f32.mrf.mxu0  ;;  %434 = vst [vmem:[#allocation10 + $0x28] sm:$0xff] %v422_v10  ;;  %v350_v20 = vmul.f32 %v801_v13, %v317_v18  ;;  %v272_v22 = vpop.f32.mrf.mxu1 }
  0xc9   :  { %v351_v21 = vmul.f32 %v787_v1, %v248_v19  ;;  %435 = vst [vmem:[#allocation10 + $0x30] sm:$0xff] %v423_v14  ;;  %v352_v24 = vmul.f32 %v789_v2, %v272_v22 }
  0xca   :  { %v383_v23 = vadd.f32 %v803_v15, %v349_v16  ;;  %v384_v25 = vadd.f32 %v805_v17, %v350_v20 }
  0xcb   :  { %v385_v26 = vadd.f32 %v791_v3, %v351_v21  ;;  %v386_v28 = vadd.f32 %v793_v5, %v352_v24 }
  0xcc   :  { %v407_v27 = vmax.f32 %v383_v23, 0.0  ;;  %v408_v29 = vmax.f32 %v384_v25, 0.0 }
  0xcd   :  { %v409_v30 = vmax.f32 %v385_v26, 0.0  ;;  %v410_v31 = vmax.f32 %v386_v28, 0.0 }
  0xce   :  { %v424_v32 = vpack.c.bf16 %v408_v29, %v407_v27 }
  0xcf   :  { %v296_v33 = vpop.f32.mrf.mxu2  ;;  %v425_v34 = vpack.c.bf16 %v410_v31, %v409_v30  ;;  %v320_v36 = vpop.f32.mrf.mxu3 }
  0xd0   :  { %v353_v35 = vmul.f32 %v799_v11, %v296_v33  ;;  %v250_v37 = vpop.f32.mrf.mxu0  ;;  %436 = vst [vmem:[#allocation10 + $0x38] sm:$0xff] %v424_v32  ;;  %v354_v38 = vmul.f32 %v801_v13, %v320_v36  ;;  %v274_v40 = vpop.f32.mrf.mxu1 }
  0xd1   :  { %v355_v39 = vmul.f32 %v787_v1, %v250_v37  ;;  %437 = vst [vmem:[#allocation10 + $0x40] sm:$0xff] %v425_v34  ;;  %v356_v42 = vmul.f32 %v789_v2, %v274_v40 }
  0xd2   :  { %v387_v41 = vadd.f32 %v803_v15, %v353_v35  ;;  %v388_v43 = vadd.f32 %v805_v17, %v354_v38 }
  0xd3   :  { %v389_v44 = vadd.f32 %v791_v3, %v355_v39  ;;  %v390_v46 = vadd.f32 %v793_v5, %v356_v42 }
  0xd4   :  { %v411_v45 = vmax.f32 %v387_v41, 0.0  ;;  %v412_v47 = vmax.f32 %v388_v43, 0.0 }
  0xd5   :  { %v413_v48 = vmax.f32 %v389_v44, 0.0  ;;  %v414_v49 = vmax.f32 %v390_v46, 0.0 }
  0xd6   :  { %v426_v50 = vpack.c.bf16 %v412_v47, %v411_v45 }
  0xd7   :  { %v298_v51 = vpop.f32.mrf.mxu2  ;;  %v427_v52 = vpack.c.bf16 %v414_v49, %v413_v48  ;;  %v322_v53 = vpop.f32.mrf.mxu3 }
  0xd8   :  { %v357_v1 = vmul.f32 %v799_v11, %v298_v51  ;;  %438 = vst [vmem:[#allocation10 + $0x48] sm:$0xff] %v426_v50  ;;  %v358_v54 = vmul.f32 %v801_v13, %v322_v53 }
  0xd9   :  { %439 = vst [vmem:[#allocation10 + $0x50] sm:$0xff] %v427_v52 }
  0xda   :  { %v391_v2 = vadd.f32 %v803_v15, %v357_v1  ;;  %v392_v3 = vadd.f32 %v805_v17, %v358_v54 }
  0xdc   :  { %v415_v55 = vmax.f32 %v391_v2, 0.0  ;;  %v416_v5 = vmax.f32 %v392_v3, 0.0 }
  0xde   :  { %v428_v56 = vpack.c.bf16 %v416_v5, %v415_v55 }
  0xe0   :  { %440 = vst [vmem:[#allocation10 + $0x58] sm:$0xff] %v428_v56 }
  0xe1   :  { %453 = dma.vmem_to_hbm [thread:$0]  %s446_s3, 1536, %s448_s13, [#allocation4], %s727_s23, %s727_s23, %s728_s24  }
  0xe2   :  { %724 = dma.done.wait [#allocation4], 1536  }
  0xe3   :  { %725 = vsyncadd [#allocation4], 4294965760 }
  0xe4   :  { %458 = vsyncpa [#allocation3], 1 }
  0xe5   :  { %459 = vsyncpa [#allocation6], 1 }
  0xe6   :  { %460 = vsyncpa [#allocation9], 1 }
  0xe7   :  { %461 = vsyncpa [#allocation4], 1 }

</bundles_post_ra>
